<compile_context>
chip_gen: v6e
topology: v6e:2x2x1
jax: 0.10.0
libtpu: 0.0.40
codegen_flags: <defaults>
</compile_context>

<pallas_src>
import functools
import math

import jax
import jax.numpy as jnp
from jax import lax
from jax.experimental import pallas as pl
from jax.experimental.pallas import tpu as pltpu

NEG_SLOPE = 0.01  # nn.LeakyReLU default
NEG_BIG = -1e30


def _leaky(x):
    return jnp.where(x >= 0, x, NEG_SLOPE * x)


# ----------------------------------------------------------------------------
# Single fused kernel: conv_top -> gcn1 -> gcn2 -> conv_end -> gmp -> lin1 ->
#                      LeakyReLU -> lin2 -> log_softmax
# ----------------------------------------------------------------------------
def fused_net_kernel(x_ref,
                     wt_ref, bt_ref, bias_top_ref,
                     rowmask_ref, anorm_ref,
                     g1w_ref, g1b_ref, g2w_ref, g2b_ref,
                     wend_ref, bend_ref, bias_end_ref,
                     poolb_ref, l1w_ref, l1b_ref, l2w_ref, l2b_ref,
                     o_ref, *, h_top, h_end, num_graphs):
    rowmask = rowmask_ref[...]                                   # [N, 1]
    anorm = anorm_ref[...]                                       # [N, N]

    def tblock(x, w, b, bias, fout):
        # one wide MXU push for Q|K|V|root (scale already folded into wq at init)
        qkvr = jnp.dot(x, w, preferred_element_type=jnp.float32) + b
        q = qkvr[:, 0 * fout:1 * fout]
        k = qkvr[:, 1 * fout:2 * fout]
        v = qkvr[:, 2 * fout:3 * fout]
        r = qkvr[:, 3 * fout:4 * fout]
        # contract on the feature axis directly (no k.T materialization)
        s = lax.dot_general(q, k, (((1,), (1,)), ((), ())),
                            preferred_element_type=jnp.float32) + bias
        m = jnp.max(s, axis=-1, keepdims=True)
        p = jnp.exp(s - m)
        inv = pl.reciprocal(jnp.sum(p, axis=-1, keepdims=True), approx=True)
        agg = jnp.dot(p, v, preferred_element_type=jnp.float32) * inv
        # rows with no incoming edges get zero aggregation (root/skip only)
        return _leaky(agg * rowmask + r)

    def gcn(xin, w, b):
        if xin.shape[1] <= w.shape[1]:
            # Fin <= Fout: run the N^2 matmul over the smaller feature width
            h = jnp.dot(jnp.dot(anorm, xin, preferred_element_type=jnp.float32),
                        w, preferred_element_type=jnp.float32)
        else:
            h = jnp.dot(anorm, jnp.dot(xin, w, preferred_element_type=jnp.float32),
                        preferred_element_type=jnp.float32)
        return _leaky(h + b)

    x = x_ref[...]
    x = tblock(x, wt_ref[...], bt_ref[...], bias_top_ref[...], h_top)   # conv_top + lr
    # dropout: inference-mode identity
    x = gcn(x, g1w_ref[...], g1b_ref[...])                               # gcn1 + lr
    x = gcn(x, g2w_ref[...], g2b_ref[...])                               # gcn2 + lr
    # conv_pools loop is empty for len(h_sizes) == 3
    x = tblock(x, wend_ref[...], bend_ref[...], bias_end_ref[...], h_end)  # conv_end + lr

    # global_max_pool: per-graph 2-D masked max (no [B, N, F] broadcast)
    pooled_rows = []
    for g in range(num_graphs):
        xb = x + poolb_ref[:, g:g + 1]                  # [N, F] + [N, 1] node bias
        pooled_rows.append(jnp.max(xb, axis=0, keepdims=True))
    pooled = jnp.concatenate(pooled_rows, axis=0)       # [B, F]

    h = _leaky(jnp.dot(pooled, l1w_ref[...],
                       preferred_element_type=jnp.float32) + l1b_ref[...])
    logits = jnp.dot(h, l2w_ref[...],
                     preferred_element_type=jnp.float32) + l2b_ref[...]
    m = jnp.max(logits, axis=-1, keepdims=True)
    lse = m + jnp.log(jnp.sum(jnp.exp(logits - m), axis=-1, keepdims=True))
    o_ref[...] = logits - lse                           # log_softmax


def fused_forward(x, params, bias_top, bias_end, row_mask, a_norm, pool_bias,
                  num_graphs):
    num_classes = params["lin2_w"].shape[1]
    h_top = params["conv_top"]["w"].shape[1] // 4
    h_end = params["conv_end"]["w"].shape[1] // 4
    kern = functools.partial(fused_net_kernel, h_top=h_top, h_end=h_end,
                             num_graphs=num_graphs)
    vmem = pl.BlockSpec(memory_space=pltpu.MemorySpace.VMEM)
    return pl.pallas_call(
        kern,
        out_shape=jax.ShapeDtypeStruct((num_graphs, num_classes), jnp.float32),
        in_specs=[vmem] * 18,
        out_specs=vmem,
    )(x,
      params["conv_top"]["w"], params["conv_top"]["b"], bias_top,
      row_mask, a_norm,
      params["gcn1_w"], params["gcn1_b"], params["gcn2_w"], params["gcn2_b"],
      params["conv_end"]["w"], params["conv_end"]["b"], bias_end,
      pool_bias,
      params["lin1_w"], params["lin1_b"], params["lin2_w"], params["lin2_b"])


# ----------------------------------------------------------------------------
# Glue: dense graph structures via one-hot matmuls (no scatter), tiny JAX
# ----------------------------------------------------------------------------
@functools.partial(jax.jit, static_argnames=("num_graphs",))
def net_forward(x, edge_index, edge_attr, batch_idx, params, num_graphs):
    n = x.shape[0]
    src, dst = edge_index[0], edge_index[1]
    oh_src = jax.nn.one_hot(src, n, dtype=jnp.float32)           # [E, N]
    oh_dst = jax.nn.one_hot(dst, n, dtype=jnp.float32)           # [E, N]

    counts = oh_dst.T @ oh_src                                   # [N, N] edge counts
    adj = jnp.minimum(counts, 1.0)                               # binary adjacency
    neg_mask = jnp.where(adj > 0.0, 0.0, NEG_BIG)                # additive attn mask
    row_mask = (jnp.sum(adj, axis=1, keepdims=True) > 0.0
                ).astype(jnp.float32)                            # [N, 1] has-in-edge

    a = adj + jnp.eye(n, dtype=jnp.float32)                      # GCN self loops
    dinv = lax.rsqrt(jnp.sum(a, axis=1))
    a_norm = a * dinv[:, None] * dinv[None, :]

    def edge_bias(we, be):
        vals = edge_attr @ we + be                               # [E, 1]
        return oh_dst.T @ (oh_src * vals)                        # [N, N]

    pt, pe = params["conv_top"], params["conv_end"]
    bias_top = edge_bias(pt["we"], pt["be"]) + neg_mask
    bias_end = edge_bias(pe["we"], pe["be"]) + neg_mask

    # per-graph node bias columns for masked global max pool: [N, B]
    pool_bias = jnp.where(
        batch_idx[:, None] == jnp.arange(num_graphs, dtype=batch_idx.dtype)[None, :],
        0.0, NEG_BIG).astype(jnp.float32)
    # TODO(synk): empty graphs would pool to -1e30; add a guard if they can occur.

    return fused_forward(x, params, bias_top, bias_end, row_mask, a_norm,
                         pool_bias, num_graphs)


# ----------------------------------------------------------------------------
# Parameter init (deterministic, in-script)
# ----------------------------------------------------------------------------
def _lin(key, fin, fout):
    lim = 1.0 / math.sqrt(fin)
    kw, kb = jax.random.split(key)
    w = jax.random.uniform(kw, (fin, fout), jnp.float32, -lim, lim)
    b = jax.random.uniform(kb, (1, fout), jnp.float32, -lim, lim)
    return w, b


def init_tblock(key, fin, fout, edge_dim):
    ks = jax.random.split(key, 5)
    wq, bq = _lin(ks[0], fin, fout)
    wk, bk = _lin(ks[1], fin, fout)
    wv, bv = _lin(ks[2], fin, fout)
    wr, br = _lin(ks[3], fin, fout)
    we, be = _lin(ks[4], edge_dim, 1)
    scale = 1.0 / math.sqrt(fout)                 # fold attention scale into Q
    w = jnp.concatenate([wq * scale, wk, wv, wr], axis=1)   # [Fin, 4*Fout]
    b = jnp.concatenate([bq * scale, bk, bv, br], axis=1)   # [1, 4*Fout]
    return {"w": w, "b": b, "we": we, "be": be}


def init_params(key, in_size, h_sizes, num_classes, edge_dim):
    ks = jax.random.split(key, 6)
    params = {
        "conv_top": init_tblock(ks[0], in_size, h_sizes[0], edge_dim),
        "conv_end": init_tblock(ks[1], h_sizes[-1], h_sizes[-1], edge_dim),
    }
    params["gcn1_w"], params["gcn1_b"] = _lin(ks[2], h_sizes[0], h_sizes[1])
    params["gcn2_w"], params["gcn2_b"] = _lin(ks[3], h_sizes[1], h_sizes[2])
    params["lin1_w"], params["lin1_b"] = _lin(ks[4], h_sizes[-1], num_classes * 2)
    params["lin2_w"], params["lin2_b"] = _lin(ks[5], num_classes * 2, num_classes)
    return params


if __name__ == "__main__":
    key = jax.random.PRNGKey(0)

    # small shapes consistent with the module
    n_per_graph, num_graphs = 6, 2
    n_nodes = n_per_graph * num_graphs
    in_size = 8
    edge_dim = 4
    h_sizes = [16, 32, 16]        # length 3 -> conv_pools ModuleList is empty
    num_classes = 4

    # bidirectional ring inside each graph (every node has incoming edges)
    srcs, dsts = [], []
    for g in range(num_graphs):
        off = g * n_per_graph
        for i in range(n_per_graph):
            a, b = off + i, off + (i + 1) % n_per_graph
            srcs += [a, b]
            dsts += [b, a]
    edge_index = jnp.array([srcs, dsts], dtype=jnp.int32)        # [2, E]
    num_edges = edge_index.shape[1]

    k_x, k_e, k_p = jax.random.split(key, 3)
    x = jax.random.normal(k_x, (n_nodes, in_size), jnp.float32)
    edge_attr = jax.random.normal(k_e, (num_edges, edge_dim), jnp.float32)
    batch_idx = jnp.repeat(jnp.arange(num_graphs, dtype=jnp.int32), n_per_graph)

    params = init_params(k_p, in_size, h_sizes, num_classes, edge_dim)

    out = net_forward(x, edge_index, edge_attr, batch_idx, params, num_graphs)
    out = jax.block_until_ready(out)
    assert out.shape == (num_graphs, num_classes)
    assert bool(jnp.all(jnp.isfinite(out)))
    print("KERNEL_OK")
</pallas_src>

<mosaic_0001>
module attributes {stable_mosaic.version = 11 : i64} {
  func.func @fused_net_kernel(%arg0: memref<12x8xf32, #tpu.memory_space<vmem>>, %arg1: memref<8x64xf32, #tpu.memory_space<vmem>>, %arg2: memref<1x64xf32, #tpu.memory_space<vmem>>, %arg3: memref<12x12xf32, #tpu.memory_space<vmem>>, %arg4: memref<12x1xf32, #tpu.memory_space<vmem>>, %arg5: memref<12x12xf32, #tpu.memory_space<vmem>>, %arg6: memref<16x32xf32, #tpu.memory_space<vmem>>, %arg7: memref<1x32xf32, #tpu.memory_space<vmem>>, %arg8: memref<32x16xf32, #tpu.memory_space<vmem>>, %arg9: memref<1x16xf32, #tpu.memory_space<vmem>>, %arg10: memref<16x64xf32, #tpu.memory_space<vmem>>, %arg11: memref<1x64xf32, #tpu.memory_space<vmem>>, %arg12: memref<12x12xf32, #tpu.memory_space<vmem>>, %arg13: memref<12x2xf32, #tpu.memory_space<vmem>>, %arg14: memref<16x8xf32, #tpu.memory_space<vmem>>, %arg15: memref<1x8xf32, #tpu.memory_space<vmem>>, %arg16: memref<8x4xf32, #tpu.memory_space<vmem>>, %arg17: memref<1x4xf32, #tpu.memory_space<vmem>>, %arg18: memref<2x4xf32, #tpu.memory_space<vmem>>) attributes {dimension_semantics = [], scalar_prefetch = 0 : i64, scratch_operands = 0 : i64, tpu.core_type = #tpu.core_type<tc>} {
    %c0 = arith.constant 0 : index
    %c0_0 = arith.constant 0 : index
    %0 = vector.load %arg4[%c0, %c0_0] : memref<12x1xf32, #tpu.memory_space<vmem>>, vector<12x1xf32>
    %c0_1 = arith.constant 0 : index
    %c0_2 = arith.constant 0 : index
    %1 = vector.load %arg5[%c0_1, %c0_2] : memref<12x12xf32, #tpu.memory_space<vmem>>, vector<12x12xf32>
    %c0_3 = arith.constant 0 : index
    %c0_4 = arith.constant 0 : index
    %2 = vector.load %arg0[%c0_3, %c0_4] : memref<12x8xf32, #tpu.memory_space<vmem>>, vector<12x8xf32>
    %c0_5 = arith.constant 0 : index
    %c0_6 = arith.constant 0 : index
    %3 = vector.load %arg1[%c0_5, %c0_6] : memref<8x64xf32, #tpu.memory_space<vmem>>, vector<8x64xf32>
    %c0_7 = arith.constant 0 : index
    %c0_8 = arith.constant 0 : index
    %4 = vector.load %arg2[%c0_7, %c0_8] : memref<1x64xf32, #tpu.memory_space<vmem>>, vector<1x64xf32>
    %c0_9 = arith.constant 0 : index
    %c0_10 = arith.constant 0 : index
    %5 = vector.load %arg3[%c0_9, %c0_10] : memref<12x12xf32, #tpu.memory_space<vmem>>, vector<12x12xf32>
    %cst = arith.constant dense<0.000000e+00> : vector<12x64xf32>
    %6 = tpu.matmul %2, %3, %cst {dimension_numbers = #tpu.dot_dimension_numbers<[1], [0], [0], [1], [0, 0, 1, 1], [], []>} : vector<12x8xf32>, vector<8x64xf32>, vector<12x64xf32> -> vector<12x64xf32>
    %7 = vector.broadcast %4 : vector<1x64xf32> to vector<12x64xf32>
    %8 = arith.addf %6, %7 : vector<12x64xf32>
    %9 = vector.extract_strided_slice %8 {offsets = [0, 0], sizes = [12, 16], strides = [1, 1]} : vector<12x64xf32> to vector<12x16xf32>
    %10 = vector.extract_strided_slice %8 {offsets = [0, 16], sizes = [12, 16], strides = [1, 1]} : vector<12x64xf32> to vector<12x16xf32>
    %11 = vector.extract_strided_slice %8 {offsets = [0, 32], sizes = [12, 16], strides = [1, 1]} : vector<12x64xf32> to vector<12x16xf32>
    %12 = vector.extract_strided_slice %8 {offsets = [0, 48], sizes = [12, 16], strides = [1, 1]} : vector<12x64xf32> to vector<12x16xf32>
    %cst_11 = arith.constant dense<0.000000e+00> : vector<12x12xf32>
    %13 = tpu.matmul %9, %10, %cst_11 {dimension_numbers = #tpu.dot_dimension_numbers<[1], [1], [0], [0], [0, 0, 1, 0], [], []>} : vector<12x16xf32>, vector<12x16xf32>, vector<12x12xf32> -> vector<12x12xf32>
    %14 = arith.addf %13, %5 : vector<12x12xf32>
    %cst_12 = arith.constant dense<0xFF800000> : vector<12xf32>
    %15 = vector.multi_reduction <maximumf>, %14, %cst_12 [1] : vector<12x12xf32> to vector<12xf32>
    %16 = vector.shape_cast %15 : vector<12xf32> to vector<12x1xf32>
    %17 = vector.broadcast %16 : vector<12x1xf32> to vector<12x12xf32>
    %18 = arith.subf %14, %17 : vector<12x12xf32>
    %19 = math.exp %18 : vector<12x12xf32>
    %cst_13 = arith.constant dense<0.000000e+00> : vector<12xf32>
    %20 = vector.multi_reduction <add>, %19, %cst_13 [1] : vector<12x12xf32> to vector<12xf32>
    %21 = vector.shape_cast %20 : vector<12xf32> to vector<12x1xf32>
    %22 = tpu.reciprocal %21 {approx = true} : vector<12x1xf32> -> vector<12x1xf32>
    %cst_14 = arith.constant dense<0.000000e+00> : vector<12x16xf32>
    %23 = tpu.matmul %19, %11, %cst_14 {dimension_numbers = #tpu.dot_dimension_numbers<[1], [0], [0], [1], [0, 0, 1, 1], [], []>} : vector<12x12xf32>, vector<12x16xf32>, vector<12x16xf32> -> vector<12x16xf32>
    %24 = vector.broadcast %22 : vector<12x1xf32> to vector<12x16xf32>
    %25 = arith.mulf %23, %24 : vector<12x16xf32>
    %26 = vector.broadcast %0 : vector<12x1xf32> to vector<12x16xf32>
    %27 = arith.mulf %25, %26 : vector<12x16xf32>
    %28 = arith.addf %27, %12 : vector<12x16xf32>
    %cst_15 = arith.constant 0.000000e+00 : f32
    %29 = vector.broadcast %cst_15 : f32 to vector<12x16xf32>
    %30 = arith.cmpf oge, %28, %29 : vector<12x16xf32>
    %cst_16 = arith.constant 0.00999999977 : f32
    %31 = vector.broadcast %cst_16 : f32 to vector<12x16xf32>
    %32 = arith.mulf %31, %28 : vector<12x16xf32>
    %33 = arith.select %30, %28, %32 : vector<12x16xi1>, vector<12x16xf32>
    %c0_17 = arith.constant 0 : index
    %c0_18 = arith.constant 0 : index
    %34 = vector.load %arg6[%c0_17, %c0_18] : memref<16x32xf32, #tpu.memory_space<vmem>>, vector<16x32xf32>
    %c0_19 = arith.constant 0 : index
    %c0_20 = arith.constant 0 : index
    %35 = vector.load %arg7[%c0_19, %c0_20] : memref<1x32xf32, #tpu.memory_space<vmem>>, vector<1x32xf32>
    %cst_21 = arith.constant dense<0.000000e+00> : vector<12x16xf32>
    %36 = tpu.matmul %1, %33, %cst_21 {dimension_numbers = #tpu.dot_dimension_numbers<[1], [0], [0], [1], [0, 0, 1, 1], [], []>} : vector<12x12xf32>, vector<12x16xf32>, vector<12x16xf32> -> vector<12x16xf32>
    %cst_22 = arith.constant dense<0.000000e+00> : vector<12x32xf32>
    %37 = tpu.matmul %36, %34, %cst_22 {dimension_numbers = #tpu.dot_dimension_numbers<[1], [0], [0], [1], [0, 0, 1, 1], [], []>} : vector<12x16xf32>, vector<16x32xf32>, vector<12x32xf32> -> vector<12x32xf32>
    %38 = vector.broadcast %35 : vector<1x32xf32> to vector<12x32xf32>
    %39 = arith.addf %37, %38 : vector<12x32xf32>
    %cst_23 = arith.constant 0.000000e+00 : f32
    %40 = vector.broadcast %cst_23 : f32 to vector<12x32xf32>
    %41 = arith.cmpf oge, %39, %40 : vector<12x32xf32>
    %cst_24 = arith.constant 0.00999999977 : f32
    %42 = vector.broadcast %cst_24 : f32 to vector<12x32xf32>
    %43 = arith.mulf %42, %39 : vector<12x32xf32>
    %44 = arith.select %41, %39, %43 : vector<12x32xi1>, vector<12x32xf32>
    %c0_25 = arith.constant 0 : index
    %c0_26 = arith.constant 0 : index
    %45 = vector.load %arg8[%c0_25, %c0_26] : memref<32x16xf32, #tpu.memory_space<vmem>>, vector<32x16xf32>
    %c0_27 = arith.constant 0 : index
    %c0_28 = arith.constant 0 : index
    %46 = vector.load %arg9[%c0_27, %c0_28] : memref<1x16xf32, #tpu.memory_space<vmem>>, vector<1x16xf32>
    %cst_29 = arith.constant dense<0.000000e+00> : vector<12x16xf32>
    %47 = tpu.matmul %44, %45, %cst_29 {dimension_numbers = #tpu.dot_dimension_numbers<[1], [0], [0], [1], [0, 0, 1, 1], [], []>} : vector<12x32xf32>, vector<32x16xf32>, vector<12x16xf32> -> vector<12x16xf32>
    %cst_30 = arith.constant dense<0.000000e+00> : vector<12x16xf32>
    %48 = tpu.matmul %1, %47, %cst_30 {dimension_numbers = #tpu.dot_dimension_numbers<[1], [0], [0], [1], [0, 0, 1, 1], [], []>} : vector<12x12xf32>, vector<12x16xf32>, vector<12x16xf32> -> vector<12x16xf32>
    %49 = vector.broadcast %46 : vector<1x16xf32> to vector<12x16xf32>
    %50 = arith.addf %48, %49 : vector<12x16xf32>
    %cst_31 = arith.constant 0.000000e+00 : f32
    %51 = vector.broadcast %cst_31 : f32 to vector<12x16xf32>
    %52 = arith.cmpf oge, %50, %51 : vector<12x16xf32>
    %cst_32 = arith.constant 0.00999999977 : f32
    %53 = vector.broadcast %cst_32 : f32 to vector<12x16xf32>
    %54 = arith.mulf %53, %50 : vector<12x16xf32>
    %55 = arith.select %52, %50, %54 : vector<12x16xi1>, vector<12x16xf32>
    %c0_33 = arith.constant 0 : index
    %c0_34 = arith.constant 0 : index
    %56 = vector.load %arg10[%c0_33, %c0_34] : memref<16x64xf32, #tpu.memory_space<vmem>>, vector<16x64xf32>
    %c0_35 = arith.constant 0 : index
    %c0_36 = arith.constant 0 : index
    %57 = vector.load %arg11[%c0_35, %c0_36] : memref<1x64xf32, #tpu.memory_space<vmem>>, vector<1x64xf32>
    %c0_37 = arith.constant 0 : index
    %c0_38 = arith.constant 0 : index
    %58 = vector.load %arg12[%c0_37, %c0_38] : memref<12x12xf32, #tpu.memory_space<vmem>>, vector<12x12xf32>
    %cst_39 = arith.constant dense<0.000000e+00> : vector<12x64xf32>
    %59 = tpu.matmul %55, %56, %cst_39 {dimension_numbers = #tpu.dot_dimension_numbers<[1], [0], [0], [1], [0, 0, 1, 1], [], []>} : vector<12x16xf32>, vector<16x64xf32>, vector<12x64xf32> -> vector<12x64xf32>
    %60 = vector.broadcast %57 : vector<1x64xf32> to vector<12x64xf32>
    %61 = arith.addf %59, %60 : vector<12x64xf32>
    %62 = vector.extract_strided_slice %61 {offsets = [0, 0], sizes = [12, 16], strides = [1, 1]} : vector<12x64xf32> to vector<12x16xf32>
    %63 = vector.extract_strided_slice %61 {offsets = [0, 16], sizes = [12, 16], strides = [1, 1]} : vector<12x64xf32> to vector<12x16xf32>
    %64 = vector.extract_strided_slice %61 {offsets = [0, 32], sizes = [12, 16], strides = [1, 1]} : vector<12x64xf32> to vector<12x16xf32>
    %65 = vector.extract_strided_slice %61 {offsets = [0, 48], sizes = [12, 16], strides = [1, 1]} : vector<12x64xf32> to vector<12x16xf32>
    %cst_40 = arith.constant dense<0.000000e+00> : vector<12x12xf32>
    %66 = tpu.matmul %62, %63, %cst_40 {dimension_numbers = #tpu.dot_dimension_numbers<[1], [1], [0], [0], [0, 0, 1, 0], [], []>} : vector<12x16xf32>, vector<12x16xf32>, vector<12x12xf32> -> vector<12x12xf32>
    %67 = arith.addf %66, %58 : vector<12x12xf32>
    %cst_41 = arith.constant dense<0xFF800000> : vector<12xf32>
    %68 = vector.multi_reduction <maximumf>, %67, %cst_41 [1] : vector<12x12xf32> to vector<12xf32>
    %69 = vector.shape_cast %68 : vector<12xf32> to vector<12x1xf32>
    %70 = vector.broadcast %69 : vector<12x1xf32> to vector<12x12xf32>
    %71 = arith.subf %67, %70 : vector<12x12xf32>
    %72 = math.exp %71 : vector<12x12xf32>
    %cst_42 = arith.constant dense<0.000000e+00> : vector<12xf32>
    %73 = vector.multi_reduction <add>, %72, %cst_42 [1] : vector<12x12xf32> to vector<12xf32>
    %74 = vector.shape_cast %73 : vector<12xf32> to vector<12x1xf32>
    %75 = tpu.reciprocal %74 {approx = true} : vector<12x1xf32> -> vector<12x1xf32>
    %cst_43 = arith.constant dense<0.000000e+00> : vector<12x16xf32>
    %76 = tpu.matmul %72, %64, %cst_43 {dimension_numbers = #tpu.dot_dimension_numbers<[1], [0], [0], [1], [0, 0, 1, 1], [], []>} : vector<12x12xf32>, vector<12x16xf32>, vector<12x16xf32> -> vector<12x16xf32>
    %77 = vector.broadcast %75 : vector<12x1xf32> to vector<12x16xf32>
    %78 = arith.mulf %76, %77 : vector<12x16xf32>
    %79 = vector.broadcast %0 : vector<12x1xf32> to vector<12x16xf32>
    %80 = arith.mulf %78, %79 : vector<12x16xf32>
    %81 = arith.addf %80, %65 : vector<12x16xf32>
    %cst_44 = arith.constant 0.000000e+00 : f32
    %82 = vector.broadcast %cst_44 : f32 to vector<12x16xf32>
    %83 = arith.cmpf oge, %81, %82 : vector<12x16xf32>
    %cst_45 = arith.constant 0.00999999977 : f32
    %84 = vector.broadcast %cst_45 : f32 to vector<12x16xf32>
    %85 = arith.mulf %84, %81 : vector<12x16xf32>
    %86 = arith.select %83, %81, %85 : vector<12x16xi1>, vector<12x16xf32>
    %c0_46 = arith.constant 0 : index
    %c0_47 = arith.constant 0 : index
    %87 = vector.load %arg13[%c0_46, %c0_47] : memref<12x2xf32, #tpu.memory_space<vmem>>, vector<12x1xf32>
    %88 = vector.broadcast %87 : vector<12x1xf32> to vector<12x16xf32>
    %89 = arith.addf %86, %88 : vector<12x16xf32>
    %cst_48 = arith.constant dense<0xFF800000> : vector<16xf32>
    %90 = vector.multi_reduction <maximumf>, %89, %cst_48 [0] : vector<12x16xf32> to vector<16xf32>
    %91 = vector.shape_cast %90 : vector<16xf32> to vector<1x16xf32>
    %c0_49 = arith.constant 0 : index
    %c1 = arith.constant 1 : index
    %92 = vector.load %arg13[%c0_49, %c1] : memref<12x2xf32, #tpu.memory_space<vmem>>, vector<12x1xf32>
    %93 = vector.broadcast %92 : vector<12x1xf32> to vector<12x16xf32>
    %94 = arith.addf %86, %93 : vector<12x16xf32>
    %cst_50 = arith.constant dense<0xFF800000> : vector<16xf32>
    %95 = vector.multi_reduction <maximumf>, %94, %cst_50 [0] : vector<12x16xf32> to vector<16xf32>
    %96 = vector.shape_cast %95 : vector<16xf32> to vector<1x16xf32>
    %97 = tpu.concatenate %91, %96 in 0 : vector<1x16xf32>, vector<1x16xf32> -> vector<2x16xf32>
    %c0_51 = arith.constant 0 : index
    %c0_52 = arith.constant 0 : index
    %98 = vector.load %arg14[%c0_51, %c0_52] : memref<16x8xf32, #tpu.memory_space<vmem>>, vector<16x8xf32>
    %cst_53 = arith.constant dense<0.000000e+00> : vector<2x8xf32>
    %99 = tpu.matmul %97, %98, %cst_53 {dimension_numbers = #tpu.dot_dimension_numbers<[1], [0], [0], [1], [0, 0, 1, 1], [], []>} : vector<2x16xf32>, vector<16x8xf32>, vector<2x8xf32> -> vector<2x8xf32>
    %c0_54 = arith.constant 0 : index
    %c0_55 = arith.constant 0 : index
    %100 = vector.load %arg15[%c0_54, %c0_55] : memref<1x8xf32, #tpu.memory_space<vmem>>, vector<1x8xf32>
    %101 = vector.broadcast %100 : vector<1x8xf32> to vector<2x8xf32>
    %102 = arith.addf %99, %101 : vector<2x8xf32>
    %cst_56 = arith.constant 0.000000e+00 : f32
    %103 = vector.broadcast %cst_56 : f32 to vector<2x8xf32>
    %104 = arith.cmpf oge, %102, %103 : vector<2x8xf32>
    %cst_57 = arith.constant 0.00999999977 : f32
    %105 = vector.broadcast %cst_57 : f32 to vector<2x8xf32>
    %106 = arith.mulf %105, %102 : vector<2x8xf32>
    %107 = arith.select %104, %102, %106 : vector<2x8xi1>, vector<2x8xf32>
    %c0_58 = arith.constant 0 : index
    %c0_59 = arith.constant 0 : index
    %108 = vector.load %arg16[%c0_58, %c0_59] : memref<8x4xf32, #tpu.memory_space<vmem>>, vector<8x4xf32>
    %cst_60 = arith.constant dense<0.000000e+00> : vector<2x4xf32>
    %109 = tpu.matmul %107, %108, %cst_60 {dimension_numbers = #tpu.dot_dimension_numbers<[1], [0], [0], [1], [0, 0, 1, 1], [], []>} : vector<2x8xf32>, vector<8x4xf32>, vector<2x4xf32> -> vector<2x4xf32>
    %c0_61 = arith.constant 0 : index
    %c0_62 = arith.constant 0 : index
    %110 = vector.load %arg17[%c0_61, %c0_62] : memref<1x4xf32, #tpu.memory_space<vmem>>, vector<1x4xf32>
    %111 = vector.broadcast %110 : vector<1x4xf32> to vector<2x4xf32>
    %112 = arith.addf %109, %111 : vector<2x4xf32>
    %cst_63 = arith.constant dense<0xFF800000> : vector<2xf32>
    %113 = vector.multi_reduction <maximumf>, %112, %cst_63 [1] : vector<2x4xf32> to vector<2xf32>
    %114 = vector.shape_cast %113 : vector<2xf32> to vector<2x1xf32>
    %115 = vector.broadcast %114 : vector<2x1xf32> to vector<2x4xf32>
    %116 = arith.subf %112, %115 : vector<2x4xf32>
    %117 = math.exp %116 : vector<2x4xf32>
    %cst_64 = arith.constant dense<0.000000e+00> : vector<2xf32>
    %118 = vector.multi_reduction <add>, %117, %cst_64 [1] : vector<2x4xf32> to vector<2xf32>
    %119 = vector.shape_cast %118 : vector<2xf32> to vector<2x1xf32>
    %120 = math.log %119 : vector<2x1xf32>
    %121 = arith.addf %114, %120 : vector<2x1xf32>
    %122 = vector.broadcast %121 : vector<2x1xf32> to vector<2x4xf32>
    %123 = arith.subf %112, %122 : vector<2x4xf32>
    %c0_65 = arith.constant 0 : index
    %c0_66 = arith.constant 0 : index
    %124 = vector.load %arg18[%c0_65, %c0_66] : memref<2x4xf32, #tpu.memory_space<vmem>>, vector<2x4xf32>
    tpu.vector_store %arg18[%c0_65, %c0_66], %123 {strides = array<i32>} : memref<2x4xf32, #tpu.memory_space<vmem>>, vector<2x4xf32>,
    return
  }
}

</mosaic_0001>

<bundles_post_ra>
// kernel: net_forward.1
= control target key start
LH: loop header
LB: loop body
LE: loop exit
PB: predicated region body
PF: predicated region fallthrough
CT: control target
= control target key end

     0   :  { %s1776_s0 = inlined_call_operand.vmem [shape: f32[12,8], index: 0, kind: input, shape index: {}]   ;;  %s1777_s1 = inlined_call_operand.vmem [shape: f32[8,64], index: 1, kind: input, shape index: {}]   ;;  %s1778_s2 = inlined_call_operand.vmem [shape: f32[1,64], index: 2, kind: input, shape index: {}]   ;;  %s1779_s3 = inlined_call_operand.vmem [shape: f32[12,12], index: 3, kind: input, shape index: {}]   ;;  %s1780_s4 = inlined_call_operand.vmem [shape: f32[12,1], index: 4, kind: input, shape index: {}]   ;;  %s1781_s5 = inlined_call_operand.vmem [shape: f32[12,12], index: 5, kind: input, shape index: {}]   ;;  %s1782_s6 = inlined_call_operand.vmem [shape: f32[16,32], index: 6, kind: input, shape index: {}]   ;;  %s1783_s7 = inlined_call_operand.vmem [shape: f32[1,32], index: 7, kind: input, shape index: {}]   ;;  %s1784_s8 = inlined_call_operand.vmem [shape: f32[32,16], index: 8, kind: input, shape index: {}]   ;;  %s1785_s9 = inlined_call_operand.vmem [shape: f32[1,16], index: 9, kind: input, shape index: {}]   ;;  %s1786_s10 = inlined_call_operand.vmem [shape: f32[16,64], index: 10, kind: input, shape index: {}]   ;;  %s1787_s11 = inlined_call_operand.vmem [shape: f32[1,64], index: 11, kind: input, shape index: {}]   ;;  %s1788_s12 = inlined_call_operand.vmem [shape: f32[12,12], index: 12, kind: input, shape index: {}]   ;;  %s1789_s13 = inlined_call_operand.vmem [shape: f32[12,2], index: 13, kind: input, shape index: {}]   ;;  %s1790_s14 = inlined_call_operand.vmem [shape: f32[16,8], index: 14, kind: input, shape index: {}]   ;;  %s1791_s15 = inlined_call_operand.vmem [shape: f32[1,8], index: 15, kind: input, shape index: {}]   ;;  %s1792_s16 = inlined_call_operand.vmem [shape: f32[8,4], index: 16, kind: input, shape index: {}]   ;;  %s1793_s17 = inlined_call_operand.vmem [shape: f32[1,4], index: 17, kind: input, shape index: {}]   ;;  %s1794_s18 = inlined_call_operand.hbm [shape: f32[2,4], index: 18, kind: output, shape index: {}]  }
   0x1   :  { %1797 = sst [smem:[#allocation5_spill]] %s1776_s0 }
   0x2   :  { %1798 = sst [smem:[#allocation6_spill]] %s1777_s1 }
   0x3   :  { %1799 = sst [smem:[#allocation7_spill]] %s1778_s2 }
   0x4   :  { %1800 = sst [smem:[#allocation8_spill]] %s1789_s13 }
   0x5   :  { %s1801_s29 = sld [smem:[#allocation6_spill]]  ;;  %vm76_vm0 = vcmask 64512  }
   0x6   :  { %s1802_s13 = sld [smem:[#allocation5_spill]] }
   0xb   :  { %v66_v0 = vld [vmem:[%s1801_s29] sm:$0xff] }
   0xc   :  { %v64_v1 = vld [vmem:[%s1802_s13] sm:$0xff]  ;;  %v65_v2 = vld [vmem:[%s1802_s13 + $0x8] sm:$0xf]  ;;  %1373 = vmatprep.subr.mxu0 %v66_v0 }
   0xd   :  { %1375 = vmatprep.mubr.msk.f32.mxu0 %vm76_vm0, %v64_v1 }
   0xe   :  { %23 = vsyncpa [#allocation3], 0  ;;  %1374 = vmatpush3.msra.mxu0 %v66_v0  ;;  %s1803_s22 = sld [smem:[#allocation7_spill]]  ;;  %vm164_vm1 = vcmask 130048   ;;  %s1511_s2 = smov 112   ;;  %vm281_vm2 = vcmask 1043456  }
   0xf   :  { %1376 = vmatmul.mubr.msk.f32.vlgmr.msra.gmra.mxu0 %vm76_vm0, %v65_v2  ;;  %s1512_s13 = smov 96   ;;  %v1513_v11 = vmov 0   ;;  %v69_v12 = vld [vmem:[%s1779_s3 + $0x8] sm:$0xf]  ;;  %v68_v14 = vld [vmem:[%s1779_s3] sm:$0xff]  ;;  %vm252_vm3 = vcmask 93184  }
  0x10   :  { %1466 = vset.pattern.permute.xlu1 %v1513_v11  ;;  %1465 = vset.pattern.permute.xlu0 %v1513_v11  ;;  %vm248_vm4 = vcmask 97280   ;;  %v60_v20 = vld [vmem:[%s1780_s4] sm:$0xff]  ;;  %s1514_s29 = smov 80   ;;  %v61_v32 = vld [vmem:[%s1780_s4 + $0x8] sm:$0xf]  ;;  %v570_v59 = vld [vmem:[%s1784_s8 + $0x18] sm:$0xff] }
  0x11   :  { %v62_v33 = vld [vmem:[%s1781_s5] sm:$0xff]  ;;  %v63_v54 = vld [vmem:[%s1781_s5 + $0x8] sm:$0xf]  ;;  %v569_v60 = vld [vmem:[%s1784_s8 + $0x10] sm:$0xff]  ;;  %vm572_vm9 = vcmask 261120   ;;  %s1804_s24 = sld [smem:[#allocation8_spill]] }
  0x12   :  { %v388_v55 = vld [vmem:[%s1782_s6 + $0x8] sm:$0xff]  ;;  %v387_v56 = vld [vmem:[%s1782_s6] sm:$0xff]  ;;  %vm1517_vm12 = vmmov 0   ;;  %vm1066_vm15 = vcmask 125952  }
  0x13   :  { %v568_v61 = vld [vmem:[%s1784_s8 + $0x8] sm:$0xff]  ;;  %v567_v62 = vld [vmem:[%s1784_s8] sm:$0xff] }
  0x14   :  { %v1291_v3 = vld [vmem:[%s1803_s22] ss:$0 sm:$0xff] }
  0x15   :  { %v1304_v63 = vld [vmem:[%s1783_s7] ss:$0 sm:$0xff] }
  0x16   :  { %v744_v11 = vld [vmem:[%s1786_s10] sm:$0xff] }
  0xcf   :  { %v1377_v4 = vpop.f32.mrf.mxu0 }
  0xd0   :  { %v155_v5 = vadd.f32 %v1377_v4, %v1291_v3 }
  0xd1   :  { %v149_v6 = vpop.f32.mrf.mxu0 }
  0xd2   :  { %v150_v7 = vadd.f32 %v1291_v3, %v149_v6  ;;  %162 = vrot.lane.b32.xlu0 %v155_v5, %s1511_s2 }
  0xd4   :  { %1382 = vmatprep.mubr.msk.f32.mxu1 %vm164_vm1, %v150_v7 }
  0xd6   :  { %160 = vrot.lane.b32.xlu0 %v150_v7, %s1511_s2 }
  0xda   :  { %272 = vrot.lane.b32.xlu0 %v155_v5, %s1512_s13 }
 0x144   :  { %v163_v8 = vpop.permute.xlu0 %162 }
 0x145   :  { %1378 = vmatprep.subr.msk.mxu1 %vm164_vm1, %v163_v8 }
 0x146   :  { %1379 = vmatpush3.xpose.msk.msra.mxu1 %vm164_vm1, %v163_v8 }
 0x148   :  { %v161_v9 = vpop.permute.xlu0 %160 }
 0x149   :  { %1380 = vmatprep.subr.msk.mxu1 %vm164_vm1, %v161_v9 }
 0x14a   :  { %1381 = vmatpush3.xpose.msk.msra.mxu1 %vm164_vm1, %v161_v9 }
 0x14b   :  { %1399 = vmatprep.subr.mxu1 %v388_v55 }
 0x14c   :  { %v273_v10 = vpop.permute.xlu0 %272 }
 0x14d   :  { %1383 = vmatmul.mubr.msk.f32.vlgmr.msra.gmra.mxu1 %vm164_vm1, %v155_v5  ;;  %1385 = vmatprep.subr.msk.mxu0 %vm281_vm2, %v273_v10 }
 0x14e   :  { %1386 = vmatpush3.msk.msra.mxu0 %vm281_vm2, %v273_v10  ;;  %1400 = vmatpush3.msra.mxu1 %v388_v55  ;;  %v745_v10 = vld [vmem:[%s1786_s10 + $0x8] sm:$0xff]  ;;  %v1096_v55 = vld [vmem:[%s1790_s14] sm:$0xff] }
 0x14f   :  { %1401 = vmatprep.subr.mxu1 %v387_v56 }
 0x150   :  { %1402 = vmatpush3.msra.mxu1 %v387_v56 }
 0x20d   :  { %v1384_v13 = vpop.f32.mrf.mxu1 }
 0x20e   :  { %v245_v15 = vadd.f32 %v1384_v13, %v69_v12  ;;  %v1309_v12 = vld [vmem:[%s1785_s9] ss:$0 sm:$0xff] }
 0x20f   :  { %v239_v16 = vpop.f32.mrf.mxu1 }
 0x210   :  { %v240_v17 = vadd.f32 %v239_v16, %v68_v14  ;;  %v253_v18 = vsel %vm252_vm3, %v245_v15, -inf }
 0x211   :  { %254 = vmax.xlane.f32.xlu1 %v253_v18 }
 0x212   :  { %v249_v19 = vsel %vm248_vm4, %v240_v17, -inf }
 0x215   :  { %250 = vmax.xlane.f32.xlu1 %v249_v19 }
 0x226   :  { %270 = vrot.lane.b32.xlu1 %v150_v7, %s1512_s13 }
 0x22a   :  { %363 = vperm.xlu1 %1466, %v60_v20  }
 0x22e   :  { %375 = vrot.lane.b32.xlu1 %v155_v5, %s1514_s29 }
 0x29a   :  { %v255_v21 = vpop.xlane.xlu1 %254 }
 0x29b   :  { %v257_v22 = vsub.f32 %v245_v15, %v255_v21  ;;  %v1313_v21 = vld [vmem:[%s1787_s11] ss:$0 sm:$0xff] }
 0x29d   :  { %v260_v23 = vmul.f32 1.442695, %v257_v22 }
 0x29e   :  { %v251_v24 = vpop.xlane.xlu1 %250 }
 0x29f   :  { %1469 = vpow2.f32 %v260_v23  ;;  %v256_v25 = vsub.f32 %v240_v17, %v251_v24 }
 0x2a1   :  { %v258_v26 = vmul.f32 1.442695, %v256_v25 }
 0x2a2   :  { %v271_v27 = vpop.permute.xlu1 %270 }
 0x2a3   :  { %1471 = vpow2.f32 %v258_v26  ;;  %1387 = vmatprep.subr.mxu0 %v271_v27 }
 0x2a4   :  { %1388 = vmatpush3.msra.mxu0 %v271_v27 }
 0x2a6   :  { %v1664_v34 = vpop.permute.xlu1 %363 }
 0x2aa   :  { %v376_v35 = vpop.permute.xlu1 %375 }
 0x2ac   :  { %v1470_v28 = vpop.eup %1469 }
 0x2ad   :  { %v265_v29 = vsel %vm252_vm3, %v1470_v28, 0.0 }
 0x2ae   :  { %266 = vadd.xlane.f32.xlu0 %v265_v29 }
 0x2b0   :  { %v1472_v30 = vpop.eup %1471 }
 0x2b1   :  { %1389 = vmatprep.mubr.msk.f32.mxu0 %vm248_vm4, %v1472_v30  ;;  %v262_v31 = vsel %vm248_vm4, %v1472_v30, 0.0  ;;  %v747_v30 = vld [vmem:[%s1788_s12] sm:$0xff] }
 0x2b2   :  { %1390 = vmatmul.mubr.msk.f32.vlgmr.msra.gmra.mxu0 %vm248_vm4, %v1470_v28  ;;  %263 = vadd.xlane.f32.xlu1 %v262_v31  ;;  %v748_v28 = vld [vmem:[%s1788_s12 + $0x8] sm:$0xf] }
 0x2b3   :  { %1396 = vmatprep.mubr.msk.f32.mxu0 %vm248_vm4, %v62_v33 }
 0x2c3   :  { %373 = vrot.lane.b32.xlu1 %v150_v7, %s1514_s29 }
 0x2c4   :  { %368 = vperm.xlu0 %1465, %v61_v32  }
 0x337   :  { %v267_v36 = vpop.xlane.xlu0 %266 }
 0x338   :  { %1473 = vrcp.f32 %v267_v36 }
 0x33b   :  { %v264_v37 = vpop.xlane.xlu1 %263 }
 0x33c   :  { %1475 = vrcp.f32 %v264_v37  ;;  %v1051_v37 = vld [vmem:[%s1804_s24] sm:$0xff] }
 0x33f   :  { %v1666_v40 = vpop.permute.xlu0 %368  ;;  %v374_v48 = vpop.permute.xlu1 %373 }
 0x345   :  { %v1474_v38 = vpop.eup %1473 }
 0x349   :  { %v1476_v42 = vpop.eup %1475 }
 0x372   :  { %v1391_v39 = vpop.f32.mrf.mxu0 }
 0x373   :  { %v360_v41 = vmul.f32 %v1474_v38, %v1391_v39  ;;  %v1052_v38 = vld [vmem:[%s1804_s24 + $0x8] sm:$0xf]  ;;  %v1515_v39 = vmov 1  }
 0x374   :  { %v350_v43 = vpop.f32.mrf.mxu0 }
 0x375   :  { %v359_v44 = vmul.f32 %v1476_v42, %v350_v43  ;;  %v372_v45 = vmul.f32 %v1666_v40, %v360_v41 }
 0x377   :  { %v371_v46 = vmul.f32 %v1664_v34, %v359_v44  ;;  %v380_v47 = vadd.f32 %v376_v35, %v372_v45 }
 0x379   :  { %v379_v49 = vadd.f32 %v374_v48, %v371_v46  ;;  %vm382_vm5 = vcmp.ge.f32.partialorder %v380_v47, 0.0  ;;  %v384_v50 = vmul.f32 0.01, %v380_v47 }
 0x37b   :  { %v386_v51 = vsel %vm382_vm5, %v380_v47, %v384_v50  ;;  %vm381_vm6 = vcmp.ge.f32.partialorder %v379_v49, 0.0  ;;  %v383_v52 = vmul.f32 0.01, %v379_v49 }
 0x37c   :  { %1392 = vmatprep.subr.msk.mxu0 %vm281_vm2, %v386_v51 }
 0x37d   :  { %1393 = vmatpush3.msk.msra.mxu0 %vm281_vm2, %v386_v51  ;;  %v385_v53 = vsel %vm381_vm6, %v379_v49, %v383_v52 }
 0x37e   :  { %1394 = vmatprep.subr.mxu0 %v385_v53 }
 0x37f   :  { %1395 = vmatpush3.msra.mxu0 %v385_v53  ;;  %v1516_v53 = vmov 0.0  }
 0x380   :  { %1397 = vmatmul.mubr.msk.f32.vlgmr.msra.gmra.mxu0 %vm248_vm4, %v63_v54  ;;  %1406 = vmatprep.subr.mxu0 %v570_v59 }
 0x381   :  { %1407 = vmatpush3.msra.mxu0 %v570_v59 }
 0x382   :  { %1408 = vmatprep.subr.mxu0 %v569_v60 }
 0x383   :  { %1409 = vmatpush3.msra.mxu0 %v569_v60 }
 0x384   :  { %1410 = vmatprep.subr.mxu0 %v568_v61 }
 0x385   :  { %1411 = vmatpush3.msra.mxu0 %v568_v61 }
 0x386   :  { %1412 = vmatprep.subr.mxu0 %v567_v62 }
 0x387   :  { %1413 = vmatpush3.msra.mxu0 %v567_v62 }
 0x440   :  { %v1398_v57 = vpop.f32.mrf.mxu0 }
 0x442   :  { %v465_v58 = vpop.f32.mrf.mxu0 }
 0x443   :  { %1403 = vmatprep.mubr.msk.f32.mxu1 %vm164_vm1, %v465_v58 }
 0x444   :  { %1404 = vmatmul.mubr.msk.f32.vlgmr.msra.gmra.mxu1 %vm164_vm1, %v1398_v57 }
 0x445   :  { %1421 = vmatprep.mubr.msk.f32.mxu1 %vm248_vm4, %v62_v33 }
 0x504   :  { %v1405_v0 = vpop.f32.mrf.mxu1 }
 0x505   :  { %v558_v1 = vadd.f32 %v1405_v0, %v1304_v63 }
 0x506   :  { %v552_v2 = vpop.f32.mrf.mxu1 }
 0x507   :  { %v553_v3 = vadd.f32 %v1304_v63, %v552_v2  ;;  %v564_v4 = vmul.f32 0.01, %v558_v1  ;;  %vm562_vm7 = vcmp.ge.f32.partialorder %v558_v1, 0.0 }
 0x509   :  { %vm561_vm8 = vcmp.ge.f32.partialorder %v553_v3, 0.0  ;;  %v563_v5 = vmul.f32 0.01, %v553_v3  ;;  %v566_v7 = vsel %vm562_vm7, %v558_v1, %v564_v4 }
 0x50b   :  { %v565_v6 = vsel %vm561_vm8, %v553_v3, %v563_v5 }
 0x50c   :  { %1414 = vmatprep.mubr.msk.f32.mxu0 %vm572_vm9, %v565_v6 }
 0x50d   :  { %1415 = vmatmul.mubr.msk.f32.vlgmr.msra.gmra.mxu0 %vm572_vm9, %v566_v7 }
 0x5cd   :  { %v1416_v8 = vpop.f32.mrf.mxu0 }
 0x5ce   :  { %1417 = vmatprep.subr.msk.mxu1 %vm281_vm2, %v1416_v8 }
 0x5cf   :  { %v645_v9 = vpop.f32.mrf.mxu0  ;;  %1418 = vmatpush3.msk.msra.mxu1 %vm281_vm2, %v1416_v8 }
 0x5d0   :  { %1419 = vmatprep.subr.mxu1 %v645_v9 }
 0x5d1   :  { %1420 = vmatpush3.msra.mxu1 %v645_v9 }
 0x5d2   :  { %1422 = vmatmul.mubr.msk.f32.vlgmr.msra.gmra.mxu1 %vm248_vm4, %v63_v54  ;;  %1424 = vmatprep.subr.mxu1 %v745_v10  ;;  %v1097_v54 = vld [vmem:[%s1790_s14 + $0x8] sm:$0xff] }
 0x5d3   :  { %1425 = vmatpush3.msra.mxu1 %v745_v10 }
 0x5d4   :  { %1426 = vmatprep.subr.mxu1 %v744_v11 }
 0x5d5   :  { %1427 = vmatpush3.msra.mxu1 %v744_v11 }
 0x692   :  { %v1423_v13 = vpop.f32.mrf.mxu1 }
 0x693   :  { %v735_v14 = vadd.f32 %v1423_v13, %v1309_v12 }
 0x694   :  { %v729_v15 = vpop.f32.mrf.mxu1 }
 0x695   :  { %v730_v16 = vadd.f32 %v1309_v12, %v729_v15  ;;  %v741_v17 = vmul.f32 0.01, %v735_v14  ;;  %vm739_vm10 = vcmp.ge.f32.partialorder %v735_v14, 0.0 }
 0x697   :  { %vm738_vm11 = vcmp.ge.f32.partialorder %v730_v16, 0.0  ;;  %v740_v18 = vmul.f32 0.01, %v730_v16  ;;  %v743_v20 = vsel %vm739_vm10, %v735_v14, %v741_v17 }
 0x699   :  { %v742_v19 = vsel %vm738_vm11, %v730_v16, %v740_v18 }
 0x69a   :  { %1428 = vmatprep.mubr.msk.f32.mxu1 %vm164_vm1, %v742_v19 }
 0x69b   :  { %1429 = vmatmul.mubr.msk.f32.vlgmr.msra.gmra.mxu1 %vm164_vm1, %v743_v20 }
 0x75b   :  { %v1430_v22 = vpop.f32.mrf.mxu1 }
 0x75c   :  { %v833_v23 = vadd.f32 %v1430_v22, %v1313_v21 }
 0x75d   :  { %v827_v24 = vpop.f32.mrf.mxu1 }
 0x75e   :  { %v828_v25 = vadd.f32 %v1313_v21, %v827_v24  ;;  %840 = vrot.lane.b32.xlu1 %v833_v23, %s1511_s2 }
 0x760   :  { %838 = vrot.lane.b32.xlu0 %v828_v25, %s1511_s2  ;;  %1435 = vmatprep.mubr.msk.f32.mxu0 %vm164_vm1, %v828_v25 }
 0x7d0   :  { %v841_v26 = vpop.permute.xlu1 %840 }
 0x7d1   :  { %1431 = vmatprep.subr.msk.mxu0 %vm164_vm1, %v841_v26 }
 0x7d2   :  { %1432 = vmatpush3.xpose.msk.msra.mxu0 %vm164_vm1, %v841_v26  ;;  %v839_v27 = vpop.permute.xlu0 %838 }
 0x7d3   :  { %1433 = vmatprep.subr.msk.mxu0 %vm164_vm1, %v839_v27 }
 0x7d6   :  { %1434 = vmatpush3.xpose.msk.msra.mxu0 %vm164_vm1, %v839_v27 }
 0x7d7   :  { %1452 = vmatprep.subr.mxu0 %v1516_v53 }
 0x7d9   :  { %1436 = vmatmul.mubr.msk.f32.vlgmr.msra.gmra.mxu0 %vm164_vm1, %v833_v23 }
 0x7da   :  { %1454 = vmatprep.mubr.msk.f32.mxu0 %vm1517_vm12, %v1516_v53 }
 0x899   :  { %v1437_v29 = vpop.f32.mrf.mxu0 }
 0x89a   :  { %v922_v31 = vadd.f32 %v1437_v29, %v748_v28 }
 0x89b   :  { %v916_v32 = vpop.f32.mrf.mxu0 }
 0x89c   :  { %v917_v33 = vadd.f32 %v916_v32, %v747_v30  ;;  %v928_v35 = vsel %vm252_vm3, %v922_v31, -inf }
 0x89d   :  { %929 = vmax.xlane.f32.xlu0 %v928_v35 }
 0x89e   :  { %v925_v36 = vsel %vm248_vm4, %v917_v33, -inf }
 0x89f   :  { %926 = vmax.xlane.f32.xlu1 %v925_v36  ;;  %v1181_v36 = vld [vmem:[%s1792_s16] sm:$0xff] }
 0x8a0   :  { %1453 = vmatpush3.msra.mxu0 %v1181_v36 }
 0x8b0   :  { %945 = vrot.lane.b32.xlu1 %v828_v25, %s1512_s13 }
 0x8b3   :  { %947 = vrot.lane.b32.xlu0 %v833_v23, %s1512_s13 }
 0x8b4   :  { %1039 = vrot.lane.b32.xlu1 %v833_v23, %s1514_s29 }
 0x8b7   :  { %1037 = vrot.lane.b32.xlu0 %v828_v25, %s1514_s29 }
 0x8b8   :  { %1055 = vperm.xlu1 %1466, %v1051_v37  }
 0x8bb   :  { %1060 = vperm.xlu0 %1465, %v1052_v38  }
 0x8bc   :  { %1467 = vset.pattern.permute.xlu1 %v1515_v39 }
 0x8bf   :  { %1468 = vset.pattern.permute.xlu0 %v1515_v39 }
 0x926   :  { %v930_v41 = vpop.xlane.xlu0 %929 }
 0x927   :  { %v932_v42 = vsub.f32 %v922_v31, %v930_v41 }
 0x928   :  { %v927_v43 = vpop.xlane.xlu1 %926 }
 0x929   :  { %v935_v44 = vmul.f32 1.442695, %v932_v42  ;;  %v931_v45 = vsub.f32 %v917_v33, %v927_v43 }
 0x92a   :  { %v948_v46 = vpop.permute.xlu0 %947 }
 0x92b   :  { %1477 = vpow2.f32 %v935_v44  ;;  %v933_v47 = vmul.f32 1.442695, %v931_v45  ;;  %1438 = vmatprep.subr.msk.mxu1 %vm281_vm2, %v948_v46  ;;  %v1325_v44 = vld [vmem:[%s1793_s17] ss:$0 sm:$0xff] }
 0x92c   :  { %1439 = vmatpush3.msk.msra.mxu1 %vm281_vm2, %v948_v46  ;;  %v946_v48 = vpop.permute.xlu1 %945  ;;  %vm1094_vm2 = vcmask 1040384  }
 0x92d   :  { %1479 = vpow2.f32 %v933_v47  ;;  %1440 = vmatprep.subr.mxu1 %v946_v48 }
 0x92e   :  { %1441 = vmatpush3.msra.mxu1 %v946_v48  ;;  %v1038_v56 = vpop.permute.xlu0 %1037 }
 0x92f   :  { %1445 = vmatprep.subr.mxu1 %v1516_v53 }
 0x930   :  { %v1040_v57 = vpop.permute.xlu1 %1039 }
 0x934   :  { %v1056_v59 = vpop.permute.xlu1 %1055 }
 0x936   :  { %v1061_v58 = vpop.permute.xlu0 %1060 }
 0x938   :  { %v1478_v49 = vpop.eup %1477 }
 0x939   :  { %v940_v50 = vsel %vm252_vm3, %v1478_v49, 0.0 }
 0x93a   :  { %v1480_v51 = vpop.eup %1479  ;;  %941 = vadd.xlane.f32.xlu0 %v940_v50 }
 0x93b   :  { %1442 = vmatprep.mubr.msk.f32.mxu1 %vm248_vm4, %v1480_v51  ;;  %v937_v52 = vsel %vm248_vm4, %v1480_v51, 0.0 }
 0x93c   :  { %938 = vadd.xlane.f32.xlu1 %v937_v52  ;;  %1443 = vmatmul.mubr.msk.f32.vlgmr.msra.gmra.mxu1 %vm248_vm4, %v1478_v49 }
 0x93d   :  { %1446 = vmatpush3.msra.mxu1 %v1097_v54  ;;  %1449 = vmatprep.mubr.msk.f32.mxu1 %vm1517_vm12, %v1516_v53 }
 0x93e   :  { %1447 = vmatprep.subr.mxu1 %v1516_v53 }
 0x93f   :  { %1448 = vmatpush3.msra.mxu1 %v1096_v55 }
 0x94d   :  { %1076 = vperm.xlu1 %1467, %v1051_v37   ;;  %v1323_v37 = vld [vmem:[%s1791_s15] ss:$0 sm:$0xff]  ;;  %s1518_s15 = smov [#allocation2]  }
 0x94e   :  { %s1283_s16 = sshll.u32 %s1518_s15, 4  ;;  %s1284_s16 = int_to_ptr.vmem [resolvable:$true] %s1283_s16 }
 0x94f   :  { %s1489_s17 = scalar_lea.vmem %s1284_s16, 32  ;;  %p1494_p1 = scmp.lt.s32.totalorder %s1284_s16, %s1284_s16 }
 0x950   :  { %1080 = vperm.xlu0 %1468, %v1052_v38   ;;  %p1490_p0 = scmp.ne.s32.totalorder %s1284_s16, %s1489_s17  ;;  %p1495_p2 = scmp.lt.s32.totalorder %s1489_s17, %s1489_s17 }
 0x952   :  { %p1496_p3 = por %p1495_p2, %p1494_p1 }
 0x954   :  { %p1497_p4 = pnand %p1496_p3, %p1490_p0 }
 0x9c3   :  { %v942_v60 = vpop.xlane.xlu0 %941 }
 0x9c4   :  { %1481 = vrcp.f32 %v942_v60 }
 0x9c5   :  { %v939_v61 = vpop.xlane.xlu1 %938 }
 0x9c6   :  { %1483 = vrcp.f32 %v939_v61 }
 0x9c9   :  { %v1077_v12 = vpop.permute.xlu1 %1076 }
 0x9cb   :  { %v1081_v8 = vpop.permute.xlu0 %1080 }
 0x9d1   :  { %v1482_v62 = vpop.eup %1481 }
 0x9d3   :  { %v1484_v1 = vpop.eup %1483 }
 0x9fc   :  { %v1444_v63 = vpop.f32.mrf.mxu1 }
 0x9fd   :  { %v1034_v0 = vmul.f32 %v1482_v62, %v1444_v63 }
 0x9fe   :  { %v1024_v2 = vpop.f32.mrf.mxu1 }
 0x9ff   :  { %v1036_v3 = vmul.f32 %v1034_v0, %v1666_v40  ;;  %v1033_v4 = vmul.f32 %v1484_v1, %v1024_v2 }
 0xa01   :  { %v1044_v5 = vadd.f32 %v1040_v57, %v1036_v3  ;;  %v1035_v6 = vmul.f32 %v1033_v4, %v1664_v34 }
 0xa03   :  { %v1043_v7 = vadd.f32 %v1038_v56, %v1035_v6  ;;  %vm1046_vm13 = vcmp.ge.f32.partialorder %v1044_v5, 0.0  ;;  %v1048_v9 = vmul.f32 0.01, %v1044_v5 }
 0xa05   :  { %v1050_v10 = vsel %vm1046_vm13, %v1044_v5, %v1048_v9  ;;  %vm1045_vm14 = vcmp.ge.f32.partialorder %v1043_v7, 0.0  ;;  %v1047_v11 = vmul.f32 0.01, %v1043_v7 }
 0xa06   :  { %v1064_v13 = vadd.f32 %v1061_v58, %v1050_v10  ;;  %v1084_v14 = vadd.f32 %v1081_v8, %v1050_v10 }
 0xa07   :  { %v1049_v15 = vsel %vm1045_vm14, %v1043_v7, %v1047_v11 }
 0xa08   :  { %v1063_v16 = vadd.f32 %v1056_v59, %v1049_v15  ;;  %v1083_v17 = vadd.f32 %v1077_v12, %v1049_v15  ;;  %v1067_v18 = vsel %vm1066_vm15, %v1064_v13, -inf  ;;  %v1086_v40 = vsel %vm1066_vm15, %v1084_v14, -inf }
 0xa0a   :  { %v1065_v19 = vsel %vm164_vm1, %v1063_v16, -inf  ;;  %v1085_v34 = vsel %vm164_vm1, %v1083_v17, -inf }
 0xa0b   :  { %v1068_v20 = vmax.f32 %v1065_v19, %v1067_v18  ;;  %v1087_v21 = vmax.f32 %v1085_v34, %v1086_v40 }
 0xa0d   :  { %v1069_v22 = vrot.slane %v1068_v20, 4  ;;  %v1088_v23 = vrot.slane %v1087_v21, 4 }
 0xa0f   :  { %v1070_v24 = vmax.f32 %v1068_v20, %v1069_v22  ;;  %v1089_v25 = vmax.f32 %v1087_v21, %v1088_v23 }
 0xa11   :  { %v1071_v26 = vrot.slane %v1070_v24, 2  ;;  %v1090_v27 = vrot.slane %v1089_v25, 2 }
 0xa13   :  { %v1072_v28 = vmax.f32 %v1070_v24, %v1071_v26  ;;  %v1091_v29 = vmax.f32 %v1089_v25, %v1090_v27 }
 0xa15   :  { %v1073_v30 = vrot.slane %v1072_v28, 1  ;;  %v1092_v31 = vrot.slane %v1091_v29, 1 }
 0xa17   :  { %v1093_v32 = vmax.f32 %v1091_v29, %v1092_v31  ;;  %v1074_v33 = vmax.f32 %v1072_v28, %v1073_v30 }
 0xa19   :  { %v1095_v35 = vsel %vm1094_vm2, %v1074_v33, %v1093_v32 }
 0xa1a   :  { %1450 = vmatmul.mubr.msk.f32.vlgmr.msra.gmra.mxu1 %vm164_vm1, %v1095_v35  ;;  %vm1262_vm1 = vcmask 25600  }
 0xada   :  { %v1174_v38 = vpop.f32.mrf.mxu1 }
 0xadb   :  { %v1175_v39 = vadd.f32 %v1323_v37, %v1174_v38 }
 0xadc   :  { %v1451_v41 = vpop.f32.mrf.mxu1 }
 0xadd   :  { %vm1178_vm3 = vcmp.ge.f32.partialorder %v1175_v39, 0.0  ;;  %v1179_v42 = vmul.f32 0.01, %v1175_v39 }
 0xadf   :  { %v1180_v43 = vsel %vm1178_vm3, %v1175_v39, %v1179_v42 }
 0xae0   :  { %1455 = vmatmul.mubr.msk.f32.vlgmr.msra.gmra.mxu0 %vm76_vm0, %v1180_v43 }
 0xba0   :  { %v1258_v45 = vpop.f32.mrf.mxu0 }
 0xba1   :  { %v1259_v46 = vadd.f32 %v1325_v44, %v1258_v45 }
 0xba2   :  { %v1456_v47 = vpop.f32.mrf.mxu0 }
 0xba3   :  { %v1263_v48 = vsel %vm1262_vm1, %v1259_v46, -inf }
 0xba4   :  { %1264 = vmax.xlane.f32.xlu1 %v1263_v48 }
 0xc2d   :  { %v1265_v49 = vpop.xlane.xlu1 %1264 }
 0xc2e   :  { %v1266_v50 = vsub.f32 %v1259_v46, %v1265_v49 }
 0xc30   :  { %v1267_v51 = vmul.f32 1.442695, %v1266_v50 }
 0xc32   :  { %1485 = vpow2.f32 %v1267_v51 }
 0xc3f   :  { %v1486_v52 = vpop.eup %1485 }
 0xc40   :  { %v1269_v53 = vsel %vm1262_vm1, %v1486_v52, 0.0 }
 0xc41   :  { %1270 = vadd.xlane.f32.xlu0 %v1269_v53 }
 0xcca   :  { %v1271_v54 = vpop.xlane.xlu0 %1270 }
 0xccb   :  { %1487 = vlog2.f32 %v1271_v54 }
 0xcd8   :  { %v1488_v55 = vpop.eup %1487 }
 0xcd9   :  { %v1273_v56 = vmul.f32 0.6931472, %v1488_v55 }
 0xcdb   :  { %v1274_v57 = vadd.f32 %v1273_v56, %v1265_v49 }
 0xcdd   :  { %v1275_v58 = vsub.f32 %v1259_v46, %v1274_v57 }
 0xcdf   :  { %1276 = vst.msk [vmem:[#allocation2] sm:$0x3] %vm1262_vm1, %v1275_v58 }
 0xce0   :  { %1500 = shalt.err (!%p1497_p4)
}
 0xce1   :  { %1286 = dma.vmem_to_hbm [thread:$0]  %s1284_s16, 32, %s1794_s18, [#allocation3]  }
 0xce2   :  { %1509 = dma.done.wait [#allocation3], 32  }
 0xce3   :  { %1510 = vsyncadd [#allocation3], 4294967264 }
 0xce4   :  { %1290 = vsyncpa [#allocation3], 1 }

</bundles_post_ra>
